<compile_context>
chip_gen: v7x
topology: tpu7x:2x2x1
jax: 0.10.0
libtpu: 0.0.40
codegen_flags: <defaults>
</compile_context>

<pallas_src>
import jax
import jax.numpy as jnp
from jax.experimental import pallas as pl
from jax.experimental.pallas import tpu as pltpu

LANE = 128   # lane-dense feature / tag width
SUB = 8      # sublane granularity


def _ceil_to(x, m):
    return ((x + m - 1) // m) * m


def _pad2(x, rows, cols, dtype):
    out = jnp.zeros((rows, cols), dtype)
    return out.at[: x.shape[0], : x.shape[1]].set(x.astype(dtype))


# ---------------------------------------------------------------------------
# Fused kernel: one grid step == whole batch (feature-major orientation).
# ---------------------------------------------------------------------------
def _pick_fused_kernel(ids_ref, wagg_t_ref, sel_t_ref, tbl_t_ref,
                       graph_w_t_ref, graph_b_t_ref, mlp_w_t_ref, mlp_b_t_ref,
                       logits_t_ref):
    # ids_ref       : (1, RP)   int32  lane-major flattened char ids (pad = 0)
    # wagg_t_ref    : (RP, BP)  f32    block-diag aggregation weights^T
    # sel_t_ref     : (BP, RP)  f32    0/1 batch->row selection matrix
    # tbl_t_ref     : (DP, VP)  bf16   (emb @ enc_w + enc_b)^T, lane/row padded
    # graph_w_t_ref : (DP, DP)  bf16   graph_w^T, zero padded
    # graph_b_t_ref : (DP, 1)   f32
    # mlp_w_t_ref   : (TP, DP)  bf16   mlp_w^T, zero padded
    # mlp_b_t_ref   : (TP, 1)   f32
    # logits_t_ref  : (TP, RP)  f32    transposed logits (sliced/transposed outside)
    VP = tbl_t_ref.shape[1]
    RP = ids_ref.shape[1]

    # ---- character embedding lookup + encoder projection -------------------
    # TODO(synk): reference Encoder (ResNet image branch + char transformer)
    # has no class body in the source; stand-in is a linear projection folded
    # into the embedding table, so whole_image / boxes_coordinate are unused.
    # one-hot (transposed) built from lane-major ids; single NN MXU pass:
    #   char^T = tbl^T @ onehot^T  ==  ((emb@enc_w+enc_b)[ids])^T   (exact gather)
    # TODO(synk): at production vocab sizes replace the one-hot matmul with a
    # scalar-prefetch / DMA row gather and tile the R dimension on the grid.
    ids = ids_ref[...]                                               # (1, RP)
    viota = jax.lax.broadcasted_iota(jnp.int32, (VP, RP), 0)
    onehot_t = (viota == ids).astype(jnp.bfloat16)                   # (VP, RP)
    char_t = jnp.dot(tbl_t_ref[...], onehot_t,
                     preferred_element_type=jnp.float32)             # (DP, RP) f32

    # ---- aggregate + graph node-mean: ONE matmul ---------------------------
    # TODO(synk): GRCN internals are not defined in the source; stand-in is a
    # dense graph conv with the all-ones init_adj, whose row-normalized
    # adjacency matmul reduces to a uniform node mean.  The compute_mask /
    # masked-mean / node-mean chain is folded into wagg (built in the wrapper),
    # valid only while per-node segment embeddings are not a separate output.
    g_pre_t = jnp.dot(char_t, wagg_t_ref[...],
                      preferred_element_type=jnp.float32)            # (DP, BP) f32
    g_t = jnp.dot(graph_w_t_ref[...], g_pre_t.astype(jnp.bfloat16),
                  preferred_element_type=jnp.float32) + graph_b_t_ref[...]
    g_t = jnp.maximum(g_t, 0.0)                                      # (DP, BP) f32

    # broadcast each batch's graph embedding back onto its rows (0/1 matmul,
    # no in-kernel reshape / sublane broadcast)
    g_rows_t = jnp.dot(g_t, sel_t_ref[...],
                       preferred_element_type=jnp.float32)           # (DP, RP) f32

    # ---- decoder hot path ---------------------------------------------------
    # TODO(synk): reference Decoder's BiLSTM + CRF bodies are not provided;
    # stand-in fuses (char + segment) and projects to IOB tag logits.  CRF
    # log-likelihood (training-only) is omitted.
    fused_t = (char_t + g_rows_t).astype(jnp.bfloat16)               # (DP, RP)
    logits_t_ref[...] = (jnp.dot(mlp_w_t_ref[...], fused_t,
                                 preferred_element_type=jnp.float32)
                         + mlp_b_t_ref[...])                         # (TP, RP)


# ---------------------------------------------------------------------------
# Wrapper: mask folding, parameter padding/transposition, single pallas_call
# ---------------------------------------------------------------------------
def forward(params, whole_image, text_segments, text_length, mask,
            boxes_coordinate):
    # TODO(synk): whole_image / boxes_coordinate / text_length feed the real
    # Encoder / Decoder which have no class bodies in the source; unused here.
    B, N, T = mask.shape
    E, D = params['enc_w'].shape
    VOCAB = params['emb'].shape[0]
    NUM_TAGS = params['mlp_w'].shape[1]
    NT = N * T
    R = B * NT

    DP = _ceil_to(max(D, LANE), LANE)          # lane-dense hidden
    TP = _ceil_to(max(NUM_TAGS, LANE), LANE)   # lane-dense tags
    VP = _ceil_to(VOCAB, SUB)
    RP = _ceil_to(R, SUB)
    BP = _ceil_to(B, SUB)
    f32 = jnp.float32

    # ---- parameter folding + lane padding (exact: padding is zeros) --------
    tbl = jnp.dot(params['emb'], params['enc_w']) + params['enc_b'].reshape(1, D)
    tbl_t = _pad2(tbl.T, DP, VP, jnp.bfloat16)                       # (DP, VP)
    graph_w_t = _pad2(params['graph_w'].T, DP, DP, jnp.bfloat16)     # (DP, DP)
    graph_b_t = _pad2(params['graph_b'].reshape(D, 1), DP, 1, f32)   # (DP, 1)
    mlp_w_t = _pad2(params['mlp_w'].T, TP, DP, jnp.bfloat16)         # (TP, DP)
    mlp_b_t = _pad2(params['mlp_b'].reshape(NUM_TAGS, 1), TP, 1, f32)

    # ---- compute_mask + aggregate + node-mean folded into matmul weights ---
    mask_f = mask.astype(f32)                                        # (B,N,T)
    node_valid = (mask_f.sum(-1, keepdims=True) > 0).astype(f32)     # (B,N,1)
    text_mask = jnp.maximum(mask_f, 1.0 - node_valid)                # ~key_padding_mask
    text_len = text_mask.sum(-1, keepdims=True)
    text_len = text_len + (text_len == 0).astype(f32)
    w_flat = (text_mask * node_valid / text_len / N).reshape(B, NT)  # (B, NT)

    eye_b = jnp.eye(B, dtype=f32)
    wagg = (eye_b[:, :, None] * w_flat[None, :, :]).reshape(B, R)    # (B, B*NT) block-diag
    wagg_t = _pad2(wagg.T, RP, BP, f32)                              # (RP, BP)
    sel_t = _pad2(jnp.repeat(eye_b, NT, axis=1), BP, RP, f32)        # (BP, RP)

    ids = jnp.zeros((1, RP), jnp.int32).at[0, :R].set(
        text_segments.reshape(R).astype(jnp.int32))                  # lane-major ids

    logits_t_pad = pl.pallas_call(
        _pick_fused_kernel,
        out_shape=jax.ShapeDtypeStruct((TP, RP), f32),
        grid=(1,),
        in_specs=[
            pl.BlockSpec((1, RP), lambda i: (0, 0)),     # ids (lane-major)
            pl.BlockSpec((RP, BP), lambda i: (0, 0)),    # aggregation weights^T
            pl.BlockSpec((BP, RP), lambda i: (0, 0)),    # batch->row selection
            pl.BlockSpec((DP, VP), lambda i: (0, 0)),    # folded enc table^T
            pl.BlockSpec((DP, DP), lambda i: (0, 0)),    # graph W^T
            pl.BlockSpec((DP, 1), lambda i: (0, 0)),     # graph b^T
            pl.BlockSpec((TP, DP), lambda i: (0, 0)),    # mlp W^T
            pl.BlockSpec((TP, 1), lambda i: (0, 0)),     # mlp b^T
        ],
        out_specs=pl.BlockSpec((TP, RP), lambda i: (0, 0)),
        compiler_params=pltpu.CompilerParams(
            dimension_semantics=("arbitrary",)),
    )(ids, wagg_t, sel_t, tbl_t, graph_w_t, graph_b_t, mlp_w_t, mlp_b_t)

    logits = logits_t_pad[:NUM_TAGS, :R].T.reshape(B, N, T, NUM_TAGS)

    # TODO(synk): reference Decoder repacks per-document sequences to build
    # new_mask; here new_mask is the flattened character validity mask.
    new_mask = mask.reshape(B, NT) != 0
    return {'logits': logits, 'new_mask': new_mask}


# ---------------------------------------------------------------------------
# Pure-JAX reference of the (stand-in) forward for a correctness check
# ---------------------------------------------------------------------------
def _reference(params, text_segments, mask):
    B, N, T = mask.shape
    D = params['enc_w'].shape[1]
    m = mask.reshape(B * N, T).astype(jnp.float32)
    node_valid = (m.sum(-1, keepdims=True) > 0).astype(jnp.float32)
    text_mask = jnp.maximum(m, 1.0 - node_valid)
    char = (params['emb'][text_segments].reshape(B * N * T, -1)
            @ params['enc_w'] + params['enc_b'].reshape(1, D))
    char = char.reshape(B * N, T, D)
    seg_sum = (char * text_mask[:, :, None]).sum(1)
    tl = text_mask.sum(1, keepdims=True)
    tl = tl + (tl == 0)
    seg = (seg_sum / tl * node_valid).reshape(B, N, D)
    g = seg.mean(1, keepdims=True)                                   # (B,1,D)
    g = jnp.maximum(g @ params['graph_w'] + params['graph_b'].reshape(1, 1, D),
                    0.0)
    fused = char.reshape(B, N, T, D) + g[:, :, None, :]
    return fused @ params['mlp_w'] + params['mlp_b']


# ---------------------------------------------------------------------------
# Deterministic parameter / input construction + run
# ---------------------------------------------------------------------------
if __name__ == "__main__":
    B, N, T = 2, 4, 8          # batch, boxes per image, chars per box
    VOCAB = 64                 # len(keys_vocab_cls)
    E = 32                     # embedding_dim
    D = 32                     # encoder out_dim
    NUM_TAGS = 5               # len(iob_labels_vocab_cls)

    key = jax.random.PRNGKey(0)
    ks = jax.random.split(key, 10)

    params = {
        'emb':     jax.random.normal(ks[0], (VOCAB, E), jnp.float32) * 0.02,
        'enc_w':   jax.random.normal(ks[1], (E, D), jnp.float32) * 0.05,
        'enc_b':   jnp.zeros((1, D), jnp.float32),
        'graph_w': jax.random.normal(ks[2], (D, D), jnp.float32) * 0.05,
        'graph_b': jnp.zeros((1, D), jnp.float32),
        'mlp_w':   jax.random.normal(ks[3], (D, NUM_TAGS), jnp.float32) * 0.05,
        'mlp_b':   jnp.zeros((1, NUM_TAGS), jnp.float32),
    }

    whole_image = jax.random.normal(ks[4], (B, 3, 16, 16), jnp.float32)  # NCHW
    text_segments = jax.random.randint(ks[5], (B, N, T), 0, VOCAB, jnp.int32)
    text_length = jax.random.randint(ks[6], (B, N), 0, T + 1, jnp.int32)
    # make sure at least one node is non-empty and one is empty
    text_length = text_length.at[0, 0].set(T).at[1, N - 1].set(0)
    mask = (jnp.arange(T)[None, None, :] < text_length[:, :, None]).astype(jnp.int32)
    boxes_coordinate = jax.random.uniform(ks[7], (B, N, 8), jnp.float32)

    fwd = jax.jit(forward)
    out = fwd(params, whole_image, text_segments, text_length, mask,
              boxes_coordinate)
    jax.block_until_ready(out)

    assert out['logits'].shape == (B, N, T, NUM_TAGS)
    assert out['new_mask'].shape == (B, N * T)

    # correctness check vs. pure-JAX reference (bf16 MXU operands -> loose tol)
    ref = _reference(params, text_segments, mask)
    assert jnp.allclose(out['logits'], ref, atol=1e-2, rtol=1e-1), (
        float(jnp.max(jnp.abs(out['logits'] - ref))))

    print("KERNEL_OK")
</pallas_src>

<mosaic_0001>
module attributes {stable_mosaic.version = 11 : i64} {
  func.func @_pick_fused_kernel(%arg0: i32, %arg1: memref<1x64xi32, #tpu.memory_space<vmem>>, %arg2: memref<64x8xf32, #tpu.memory_space<vmem>>, %arg3: memref<8x64xf32, #tpu.memory_space<vmem>>, %arg4: memref<128x64xbf16, #tpu.memory_space<vmem>>, %arg5: memref<128x128xbf16, #tpu.memory_space<vmem>>, %arg6: memref<128x1xf32, #tpu.memory_space<vmem>>, %arg7: memref<128x128xbf16, #tpu.memory_space<vmem>>, %arg8: memref<128x1xf32, #tpu.memory_space<vmem>>, %arg9: memref<128x64xf32, #tpu.memory_space<vmem>>) attributes {dimension_semantics = [#tpu.dimension_semantics<arbitrary>], iteration_bounds = array<i64: 1>, scalar_prefetch = 0 : i64, scratch_operands = 0 : i64, tpu.core_type = #tpu.core_type<tc>, window_params = [{pipeline_mode = #tpu.pipeline_mode<synchronous>, transform_indices = @transform_0, window_bounds = array<i64: 1, 64>}, {pipeline_mode = #tpu.pipeline_mode<synchronous>, transform_indices = @transform_1, window_bounds = array<i64: 64, 8>}, {pipeline_mode = #tpu.pipeline_mode<synchronous>, transform_indices = @transform_2, window_bounds = array<i64: 8, 64>}, {pipeline_mode = #tpu.pipeline_mode<synchronous>, transform_indices = @transform_3, window_bounds = array<i64: 128, 64>}, {pipeline_mode = #tpu.pipeline_mode<synchronous>, transform_indices = @transform_4, window_bounds = array<i64: 128, 128>}, {pipeline_mode = #tpu.pipeline_mode<synchronous>, transform_indices = @transform_5, window_bounds = array<i64: 128, 1>}, {pipeline_mode = #tpu.pipeline_mode<synchronous>, transform_indices = @transform_6, window_bounds = array<i64: 128, 128>}, {pipeline_mode = #tpu.pipeline_mode<synchronous>, transform_indices = @transform_7, window_bounds = array<i64: 128, 1>}, {pipeline_mode = #tpu.pipeline_mode<synchronous>, transform_indices = @transform_8, window_bounds = array<i64: 128, 64>}]} {
    %c0 = arith.constant 0 : index
    %c0_0 = arith.constant 0 : index
    %0 = vector.load %arg1[%c0, %c0_0] : memref<1x64xi32, #tpu.memory_space<vmem>>, vector<1x64xi32>
    %1 = tpu.iota {dimensions = array<i32: 0>} : vector<64x64xi32>
    %2 = vector.broadcast %0 : vector<1x64xi32> to vector<64x64xi32>
    %3 = arith.cmpi eq, %1, %2 : vector<64x64xi32>
    %4 = arith.extui %3 : vector<64x64xi1> to vector<64x64xi32>
    %5 = arith.sitofp %4 : vector<64x64xi32> to vector<64x64xf32>
    %6 = arith.truncf %5 : vector<64x64xf32> to vector<64x64xbf16>
    %c0_1 = arith.constant 0 : index
    %c0_2 = arith.constant 0 : index
    %7 = vector.load %arg4[%c0_1, %c0_2] : memref<128x64xbf16, #tpu.memory_space<vmem>>, vector<128x64xbf16>
    %cst = arith.constant dense<0.000000e+00> : vector<128x64xf32>
    %8 = tpu.matmul %7, %6, %cst {dimension_numbers = #tpu.dot_dimension_numbers<[1], [0], [0], [1], [0, 0, 1, 1], [], []>} : vector<128x64xbf16>, vector<64x64xbf16>, vector<128x64xf32> -> vector<128x64xf32>
    %c0_3 = arith.constant 0 : index
    %c0_4 = arith.constant 0 : index
    %9 = vector.load %arg2[%c0_3, %c0_4] : memref<64x8xf32, #tpu.memory_space<vmem>>, vector<64x8xf32>
    %cst_5 = arith.constant dense<0.000000e+00> : vector<128x8xf32>
    %10 = tpu.matmul %8, %9, %cst_5 {dimension_numbers = #tpu.dot_dimension_numbers<[1], [0], [0], [1], [0, 0, 1, 1], [], []>} : vector<128x64xf32>, vector<64x8xf32>, vector<128x8xf32> -> vector<128x8xf32>
    %c0_6 = arith.constant 0 : index
    %c0_7 = arith.constant 0 : index
    %11 = vector.load %arg5[%c0_6, %c0_7] : memref<128x128xbf16, #tpu.memory_space<vmem>>, vector<128x128xbf16>
    %12 = arith.truncf %10 : vector<128x8xf32> to vector<128x8xbf16>
    %cst_8 = arith.constant dense<0.000000e+00> : vector<128x8xf32>
    %13 = tpu.matmul %11, %12, %cst_8 {dimension_numbers = #tpu.dot_dimension_numbers<[1], [0], [0], [1], [0, 0, 1, 1], [], []>} : vector<128x128xbf16>, vector<128x8xbf16>, vector<128x8xf32> -> vector<128x8xf32>
    %c0_9 = arith.constant 0 : index
    %c0_10 = arith.constant 0 : index
    %14 = vector.load %arg6[%c0_9, %c0_10] : memref<128x1xf32, #tpu.memory_space<vmem>>, vector<128x1xf32>
    %15 = vector.broadcast %14 : vector<128x1xf32> to vector<128x8xf32>
    %16 = arith.addf %13, %15 : vector<128x8xf32>
    %cst_11 = arith.constant 0.000000e+00 : f32
    %17 = vector.broadcast %cst_11 : f32 to vector<128x8xf32>
    %18 = arith.maximumf %16, %17 : vector<128x8xf32>
    %c0_12 = arith.constant 0 : index
    %c0_13 = arith.constant 0 : index
    %19 = vector.load %arg3[%c0_12, %c0_13] : memref<8x64xf32, #tpu.memory_space<vmem>>, vector<8x64xf32>
    %cst_14 = arith.constant dense<0.000000e+00> : vector<128x64xf32>
    %20 = tpu.matmul %18, %19, %cst_14 {dimension_numbers = #tpu.dot_dimension_numbers<[1], [0], [0], [1], [0, 0, 1, 1], [], []>} : vector<128x8xf32>, vector<8x64xf32>, vector<128x64xf32> -> vector<128x64xf32>
    %21 = arith.addf %8, %20 : vector<128x64xf32>
    %22 = arith.truncf %21 : vector<128x64xf32> to vector<128x64xbf16>
    %c0_15 = arith.constant 0 : index
    %c0_16 = arith.constant 0 : index
    %23 = vector.load %arg7[%c0_15, %c0_16] : memref<128x128xbf16, #tpu.memory_space<vmem>>, vector<128x128xbf16>
    %cst_17 = arith.constant dense<0.000000e+00> : vector<128x64xf32>
    %24 = tpu.matmul %23, %22, %cst_17 {dimension_numbers = #tpu.dot_dimension_numbers<[1], [0], [0], [1], [0, 0, 1, 1], [], []>} : vector<128x128xbf16>, vector<128x64xbf16>, vector<128x64xf32> -> vector<128x64xf32>
    %c0_18 = arith.constant 0 : index
    %c0_19 = arith.constant 0 : index
    %25 = vector.load %arg8[%c0_18, %c0_19] : memref<128x1xf32, #tpu.memory_space<vmem>>, vector<128x1xf32>
    %26 = vector.broadcast %25 : vector<128x1xf32> to vector<128x64xf32>
    %27 = arith.addf %24, %26 : vector<128x64xf32>
    %c0_20 = arith.constant 0 : index
    %c0_21 = arith.constant 0 : index
    %28 = vector.load %arg9[%c0_20, %c0_21] : memref<128x64xf32, #tpu.memory_space<vmem>>, vector<128x64xf32>
    tpu.vector_store %arg9[%c0_20, %c0_21], %27 {strides = array<i32>} : memref<128x64xf32, #tpu.memory_space<vmem>>, vector<128x64xf32>,
    return
  }
  func.func @transform_0(%arg0: i32) -> (i32, i32) {
    %c0_i32 = arith.constant 0 : i32
    %c0_i32_0 = arith.constant 0 : i32
    %c0_i32_1 = arith.constant 0 : i32
    return %c0_i32, %c0_i32_0 : i32, i32
  }
  func.func @transform_1(%arg0: i32) -> (i32, i32) {
    %c0_i32 = arith.constant 0 : i32
    %c0_i32_0 = arith.constant 0 : i32
    %c0_i32_1 = arith.constant 0 : i32
    return %c0_i32, %c0_i32_0 : i32, i32
  }
  func.func @transform_2(%arg0: i32) -> (i32, i32) {
    %c0_i32 = arith.constant 0 : i32
    %c0_i32_0 = arith.constant 0 : i32
    %c0_i32_1 = arith.constant 0 : i32
    return %c0_i32, %c0_i32_0 : i32, i32
  }
  func.func @transform_3(%arg0: i32) -> (i32, i32) {
    %c0_i32 = arith.constant 0 : i32
    %c0_i32_0 = arith.constant 0 : i32
    %c0_i32_1 = arith.constant 0 : i32
    return %c0_i32, %c0_i32_0 : i32, i32
  }
  func.func @transform_4(%arg0: i32) -> (i32, i32) {
    %c0_i32 = arith.constant 0 : i32
    %c0_i32_0 = arith.constant 0 : i32
    %c0_i32_1 = arith.constant 0 : i32
    return %c0_i32, %c0_i32_0 : i32, i32
  }
  func.func @transform_5(%arg0: i32) -> (i32, i32) {
    %c0_i32 = arith.constant 0 : i32
    %c0_i32_0 = arith.constant 0 : i32
    %c0_i32_1 = arith.constant 0 : i32
    return %c0_i32, %c0_i32_0 : i32, i32
  }
  func.func @transform_6(%arg0: i32) -> (i32, i32) {
    %c0_i32 = arith.constant 0 : i32
    %c0_i32_0 = arith.constant 0 : i32
    %c0_i32_1 = arith.constant 0 : i32
    return %c0_i32, %c0_i32_0 : i32, i32
  }
  func.func @transform_7(%arg0: i32) -> (i32, i32) {
    %c0_i32 = arith.constant 0 : i32
    %c0_i32_0 = arith.constant 0 : i32
    %c0_i32_1 = arith.constant 0 : i32
    return %c0_i32, %c0_i32_0 : i32, i32
  }
  func.func @transform_8(%arg0: i32) -> (i32, i32) {
    %c0_i32 = arith.constant 0 : i32
    %c0_i32_0 = arith.constant 0 : i32
    %c0_i32_1 = arith.constant 0 : i32
    return %c0_i32, %c0_i32_0 : i32, i32
  }
}

</mosaic_0001>

<bundles_post_ra>
// kernel: forward.1
= control target key start
LH: loop header
LB: loop body
LE: loop exit
PB: predicated region body
PF: predicated region fallthrough
CT: control target
= control target key end

     0   :  { %v31_v0 = vlaneseq  ;;  %vm128_vm0 = vcmask 523264   ;;  %v1608_v9 = vmov 1.0|1.0   ;;  %v1609_v49 = vmov 0   ;;  %s2029_s0 = inlined_call_operand.vmem [shape: s32[1,64], index: 0, kind: input, shape index: {}]   ;;  %s2030_s3 = inlined_call_operand.vmem [shape: bf16[128,64], index: 3, kind: input, shape index: {}]   ;;  %s2031_s1 = inlined_call_operand.vmem [shape: f32[64,8], index: 1, kind: input, shape index: {}]   ;;  %s2032_s4 = inlined_call_operand.vmem [shape: bf16[128,128], index: 4, kind: input, shape index: {}]   ;;  %s2033_s5 = inlined_call_operand.vmem [shape: f32[128,1], index: 5, kind: input, shape index: {}]   ;;  %s2034_s7 = inlined_call_operand.vmem [shape: f32[128,1], index: 7, kind: input, shape index: {}]   ;;  %s2035_s2 = inlined_call_operand.vmem [shape: f32[8,64], index: 2, kind: input, shape index: {}]   ;;  %s2036_s6 = inlined_call_operand.vmem [shape: bf16[128,128], index: 6, kind: input, shape index: {}]   ;;  %s2037_s8 = inlined_call_operand.vmem [shape: f32[128,64], index: 8, kind: output, shape index: {}]  }
   0x1   :  { %v1228_v1 = vld [vmem:[%s2029_s0] ss:$0 sm:$0xff]  ;;  %v251_v14 = vld [vmem:[%s2031_s1 + $0x8] sm:$0xff]  ;;  %v252_v15 = vld [vmem:[%s2031_s1 + $0x10] sm:$0xff]  ;;  %1582 = vset.pattern.permute.xlu0 %v1609_v49  ;;  %1583 = vset.pattern.permute.xlu1 %v1609_v49  ;;  %vm733_vm13 = vcmask 64512  }
   0x2   :  { %v32_v2 = vshrl.u32 %v31_v0, 7  ;;  %v1584_v3 = vld [vmem:[%s2030_s3] sm:$0xff]   ;;  %v253_v16 = vld [vmem:[%s2031_s1 + $0x18] sm:$0xff]  ;;  %v255_v20 = vld [vmem:[%s2031_s1 + $0x28] sm:$0xff] }
   0x3   :  { %1402 = vmatprep.mubr.msk.bf16.mxu0 %vm128_vm0, %v1584_v3  ;;  %v250_v13 = vld [vmem:[%s2031_s1] sm:$0xff]  ;;  %v1552_v18 = vpack.c.bf16 %v253_v16, %v252_v15  ;;  %v1585_v22 = vld [vmem:[%s2030_s3 + $0x8] sm:$0xff]   ;;  %v1586_v23 = vld [vmem:[%s2030_s3 + $0x10] sm:$0xff]  }
   0x4   :  { %v33_v4 = vadd.s32 8, %v32_v2  ;;  %vm44_vm1 = vcmp.eq.s32.totalorder %v32_v2, %v1228_v1  ;;  %v34_v5 = vadd.s32 16, %v32_v2  ;;  %v35_v6 = vadd.s32 24, %v32_v2  ;;  %v254_v19 = vld [vmem:[%s2031_s1 + $0x20] sm:$0xff]  ;;  %v1587_v24 = vld [vmem:[%s2030_s3 + $0x18] sm:$0xff]   ;;  %v1589_v26 = vld [vmem:[%s2030_s3 + $0x28] sm:$0xff]  }
   0x5   :  { %v36_v7 = vadd.s32 32, %v32_v2  ;;  %v37_v8 = vadd.s32 40, %v32_v2  ;;  %v38_v10 = vadd.s32 48, %v32_v2  ;;  %v39_v11 = vadd.s32 56, %v32_v2  ;;  %v1588_v25 = vld [vmem:[%s2030_s3 + $0x20] sm:$0xff]   ;;  %v1590_v27 = vld [vmem:[%s2030_s3 + $0x30] sm:$0xff]  }
   0x6   :  { %vm45_vm2 = vcmp.eq.s32.totalorder %v33_v4, %v1228_v1  ;;  %vm46_vm3 = vcmp.eq.s32.totalorder %v34_v5, %v1228_v1  ;;  %vm47_vm4 = vcmp.eq.s32.totalorder %v35_v6, %v1228_v1  ;;  %v1548_v17 = vpack.c.bf16 %v251_v14, %v250_v13  ;;  %v1591_v28 = vld [vmem:[%s2030_s3 + $0x38] sm:$0xff]   ;;  %v256_v29 = vld [vmem:[%s2031_s1 + $0x30] sm:$0xff]  ;;  %v1592_v48 = vld [vmem:[%s2032_s4] sm:$0xff]  }
   0x7   :  { %vm1245_vm5 = vmpackc.low %vm45_vm2, %vm44_vm1  ;;  %vm48_vm7 = vcmp.eq.s32.totalorder %v36_v7, %v1228_v1  ;;  %vm49_vm8 = vcmp.eq.s32.totalorder %v37_v8, %v1228_v1  ;;  %vm50_vm10 = vcmp.eq.s32.totalorder %v38_v10, %v1228_v1  ;;  %vm51_vm11 = vcmp.eq.s32.totalorder %v39_v11, %v1228_v1  ;;  %v257_v30 = vld [vmem:[%s2031_s1 + $0x38] sm:$0xff]  ;;  %v475_v50 = vld [vmem:[%s2033_s5] sm:$0xff] }
   0x8   :  { %1394 = vmatprep.subr.msk.bf16.mxu0 %vm1245_vm5, %v1608_v9  ;;  %vm1247_vm6 = vmpackc.low %vm47_vm4, %vm46_vm3  ;;  %1549 = vmatprep.subr.bf16.mxu1 %v1548_v17  ;;  %v1556_v21 = vpack.c.bf16 %v255_v20, %v254_v19  ;;  %v1560_v31 = vpack.c.bf16 %v257_v30, %v256_v29  ;;  %v477_v51 = vld [vmem:[%s2033_s5 + $0x10] sm:$0xff]  ;;  %v476_v52 = vld [vmem:[%s2033_s5 + $0x8] sm:$0xff] }
   0x9   :  { %1395 = vmatpush3.bf16.msk.msra.mxu0 %vm1245_vm5, %v1608_v9  ;;  %vm1662_vm9 = vmpackc.low %vm49_vm8, %vm48_vm7  ;;  %1551 = vmatpush3.bf16.msra.mxu1 %v1548_v17  ;;  %v478_v53 = vld [vmem:[%s2033_s5 + $0x18] sm:$0xff]  ;;  %v479_v54 = vld [vmem:[%s2033_s5 + $0x20] sm:$0xff] }
   0xa   :  { %1396 = vmatprep.subr.msk.bf16.mxu0 %vm1247_vm6, %v1608_v9  ;;  %vm1251_vm12 = vmpackc.low %vm51_vm11, %vm50_vm10  ;;  %1553 = vmatprep.subr.bf16.mxu1 %v1552_v18  ;;  %v480_v55 = vld [vmem:[%s2033_s5 + $0x28] sm:$0xff]  ;;  %v481_v56 = vld [vmem:[%s2033_s5 + $0x30] sm:$0xff] }
   0xb   :  { %493 = vperm.xlu0 %1582, %v475_v50   ;;  %503 = vperm.xlu1 %1583, %v477_v51   ;;  %v482_v57 = vld [vmem:[%s2033_s5 + $0x38] sm:$0xff]  ;;  %v483_v58 = vld [vmem:[%s2033_s5 + $0x40] sm:$0xff]  ;;  %v484_v59 = vld [vmem:[%s2033_s5 + $0x48] sm:$0xff] }
   0xc   :  { %v485_v60 = vld [vmem:[%s2033_s5 + $0x50] sm:$0xff]  ;;  %v486_v61 = vld [vmem:[%s2033_s5 + $0x58] sm:$0xff]  ;;  %v487_v62 = vld [vmem:[%s2033_s5 + $0x60] sm:$0xff] }
   0xd   :  { %1397 = vmatpush3.bf16.msk.msra.mxu0 %vm1247_vm6, %v1608_v9  ;;  %1555 = vmatpush3.bf16.msra.mxu1 %v1552_v18  ;;  %v488_v63 = vld [vmem:[%s2033_s5 + $0x68] sm:$0xff]  ;;  %v489_v0 = vld [vmem:[%s2033_s5 + $0x70] sm:$0xff]  ;;  %v490_v1 = vld [vmem:[%s2033_s5 + $0x78] sm:$0xff] }
   0xe   :  { %1398 = vmatprep.subr.msk.bf16.mxu0 %vm1662_vm9, %v1608_v9  ;;  %1557 = vmatprep.subr.bf16.mxu1 %v1556_v21  ;;  %v967_v2 = vld [vmem:[%s2034_s7] sm:$0xff]  ;;  %v968_v3 = vld [vmem:[%s2034_s7 + $0x8] sm:$0xff]  ;;  %v969_v4 = vld [vmem:[%s2034_s7 + $0x10] sm:$0xff] }
   0xf   :  { %498 = vperm.xlu0 %1582, %v476_v52   ;;  %508 = vperm.xlu1 %1583, %v478_v53   ;;  %v732_v5 = vld [vmem:[%s2035_s2] sm:$0xff]  ;;  %v970_v6 = vld [vmem:[%s2034_s7 + $0x18] sm:$0xff]  ;;  %v972_v8 = vld [vmem:[%s2034_s7 + $0x28] sm:$0xff] }
  0x10   :  { %v971_v7 = vld [vmem:[%s2034_s7 + $0x20] sm:$0xff]  ;;  %v974_v10 = vld [vmem:[%s2034_s7 + $0x38] sm:$0xff]  ;;  %v976_v12 = vld [vmem:[%s2034_s7 + $0x48] sm:$0xff] }
  0x11   :  { %1399 = vmatpush3.bf16.msk.msra.mxu0 %vm1662_vm9, %v1608_v9  ;;  %1559 = vmatpush3.bf16.msra.mxu1 %v1556_v21  ;;  %v975_v11 = vld [vmem:[%s2034_s7 + $0x40] sm:$0xff]  ;;  %v977_v13 = vld [vmem:[%s2034_s7 + $0x50] sm:$0xff]  ;;  %v978_v14 = vld [vmem:[%s2034_s7 + $0x58] sm:$0xff] }
  0x12   :  { %1400 = vmatprep.subr.msk.bf16.mxu0 %vm1251_vm12, %v1608_v9  ;;  %1561 = vmatprep.subr.bf16.mxu1 %v1560_v31  ;;  %v979_v15 = vld [vmem:[%s2034_s7 + $0x60] sm:$0xff]  ;;  %v980_v16 = vld [vmem:[%s2034_s7 + $0x68] sm:$0xff]  ;;  %v981_v17 = vld [vmem:[%s2034_s7 + $0x70] sm:$0xff] }
  0x13   :  { %513 = vperm.xlu0 %1582, %v479_v54   ;;  %518 = vperm.xlu1 %1583, %v480_v55   ;;  %v982_v18 = vld [vmem:[%s2034_s7 + $0x78] sm:$0xff] }
  0x15   :  { %1401 = vmatpush3.bf16.msk.msra.mxu0 %vm1251_vm12, %v1608_v9  ;;  %1563 = vmatpush3.bf16.msra.mxu1 %v1560_v31  ;;  %v973_v9 = vld [vmem:[%s2034_s7 + $0x30] sm:$0xff] }
  0x16   :  { %1490 = vmatprep.subr.mxu1 %v732_v5 }
  0x17   :  { %523 = vperm.xlu0 %1582, %v481_v56   ;;  %528 = vperm.xlu1 %1583, %v482_v57  }
  0x18   :  { %1403 = vmatmul.mubr.msk.bf16.vlgmr.msra.gmra.mrb[0].mxu0 %vm128_vm0, %v1585_v22 }
  0x19   :  { %1406 = vmatprep.mubr.msk.bf16.mxu0 %vm128_vm0, %v1586_v23 }
  0x1b   :  { %533 = vperm.xlu0 %1582, %v483_v58   ;;  %538 = vperm.xlu1 %1583, %v484_v59   ;;  %v1593_v59 = vld [vmem:[%s2032_s4 + $0x8] sm:$0xff]  }
  0x1f   :  { %543 = vperm.xlu0 %1582, %v485_v60   ;;  %548 = vperm.xlu1 %1583, %v486_v61   ;;  %v1594_v60 = vld [vmem:[%s2032_s4 + $0x10] sm:$0xff]   ;;  %v1595_v61 = vld [vmem:[%s2032_s4 + $0x18] sm:$0xff]  }
  0x20   :  { %1407 = vmatmul.mubr.msk.bf16.gmra.mrb[4].mxu0 %vm128_vm0, %v1587_v24 }
  0x21   :  { %1410 = vmatprep.mubr.msk.bf16.mxu0 %vm128_vm0, %v1588_v25 }
  0x23   :  { %553 = vperm.xlu0 %1582, %v487_v62   ;;  %558 = vperm.xlu1 %1583, %v488_v63   ;;  %v1596_v62 = vld [vmem:[%s2032_s4 + $0x20] sm:$0xff]   ;;  %v1597_v63 = vld [vmem:[%s2032_s4 + $0x28] sm:$0xff]  }
  0x27   :  { %563 = vperm.xlu0 %1582, %v489_v0   ;;  %568 = vperm.xlu1 %1583, %v490_v1   ;;  %v1598_v0 = vld [vmem:[%s2032_s4 + $0x30] sm:$0xff]   ;;  %v1599_v1 = vld [vmem:[%s2032_s4 + $0x38] sm:$0xff]  }
  0x28   :  { %1411 = vmatmul.mubr.msk.bf16.gmra.mrb[8].mxu0 %vm128_vm0, %v1589_v26 }
  0x29   :  { %1414 = vmatprep.mubr.msk.bf16.mxu0 %vm128_vm0, %v1590_v27 }
  0x2b   :  { %985 = vperm.xlu0 %1582, %v967_v2   ;;  %990 = vperm.xlu1 %1583, %v968_v3  }
  0x2f   :  { %995 = vperm.xlu0 %1582, %v969_v4   ;;  %1000 = vperm.xlu1 %1583, %v970_v6  }
  0x30   :  { %1415 = vmatmul.mubr.msk.bf16.gmra.mrb[12].mxu0 %vm128_vm0, %v1591_v28 }
  0x31   :  { %1474 = vmatprep.mubr.bf16.mxu0 %v1592_v48 }
  0x33   :  { %1005 = vperm.xlu0 %1582, %v971_v7   ;;  %1010 = vperm.xlu1 %1583, %v972_v8  }
  0x37   :  { %1015 = vperm.xlu0 %1582, %v973_v9   ;;  %1020 = vperm.xlu1 %1583, %v974_v10  }
  0x3b   :  { %1025 = vperm.xlu0 %1582, %v975_v11   ;;  %1030 = vperm.xlu1 %1583, %v976_v12  }
  0x3f   :  { %1035 = vperm.xlu0 %1582, %v977_v13   ;;  %1040 = vperm.xlu1 %1583, %v978_v14  }
  0x43   :  { %1045 = vperm.xlu0 %1582, %v979_v15   ;;  %1050 = vperm.xlu1 %1583, %v980_v16  }
  0x47   :  { %1055 = vperm.xlu0 %1582, %v981_v17   ;;  %1060 = vperm.xlu1 %1583, %v982_v18  }
  0x8a   :  { %v494_v2 = vpop.permute.xlu0 %493  ;;  %v504_v3 = vpop.permute.xlu1 %503 }
  0x8e   :  { %v499_v4 = vpop.permute.xlu0 %498 }
  0x92   :  { %v514_v6 = vpop.permute.xlu0 %513 }
  0x96   :  { %v524_v10 = vpop.permute.xlu0 %523 }
  0xeb   :  { %v1722_v32 = vpop.f32.mrb[0].mxu0 }
  0xec   :  { %v1724_v33 = vpop.f32.mrb[1].mxu0 }
  0xed   :  { %v1726_v34 = vpop.f32.mrb[2].mxu0  ;;  %1434 = vmatprep.mubr.msk.f32.mxu1 %vm128_vm0, %v1724_v33 }
  0xee   :  { %v1730_v35 = vpop.f32.mrb[3].mxu0 }
  0xef   :  { %1435 = vmatmul.mubr.msk.f32.vlgmr.msra.gmra.mrb[0].mxu1 %vm128_vm0, %v1730_v35 }
  0xf0   :  { %1437 = vmatprep.mubr.msk.f32.mxu1 %vm128_vm0, %v1722_v32  ;;  %1491 = vmatpush3.msra.mxu1 %v732_v5  ;;  %v509_v5 = vpop.permute.xlu1 %508 }
  0xf3   :  { %v1736_v36 = vpop.f32.mrb[4].mxu0  ;;  %1438 = vmatmul.mubr.msk.f32.gmra.mrb[2].mxu1 %vm128_vm0, %v1726_v34 }
  0xf4   :  { %v1740_v37 = vpop.f32.mrb[5].mxu0  ;;  %v519_v7 = vpop.permute.xlu1 %518 }
  0xf5   :  { %v1742_v38 = vpop.f32.mrb[6].mxu0  ;;  %1440 = vmatprep.mubr.msk.f32.mxu1 %vm128_vm0, %v1740_v37 }
  0xf6   :  { %v1746_v39 = vpop.f32.mrb[7].mxu0 }
  0xf7   :  { %1441 = vmatmul.mubr.msk.f32.gmra.mrb[4].mxu1 %vm128_vm0, %v1746_v39 }
  0xf8   :  { %1443 = vmatprep.mubr.msk.f32.mxu1 %vm128_vm0, %v1736_v36  ;;  %v529_v17 = vpop.permute.xlu1 %528 }
  0xfb   :  { %v1752_v40 = vpop.f32.mrb[8].mxu0  ;;  %1444 = vmatmul.mubr.msk.f32.gmra.mrb[6].mxu1 %vm128_vm0, %v1742_v38 }
  0xfc   :  { %v1756_v41 = vpop.f32.mrb[9].mxu0 }
  0xfd   :  { %v1758_v42 = vpop.f32.mrb[10].mxu0  ;;  %1446 = vmatprep.mubr.msk.f32.mxu1 %vm128_vm0, %v1756_v41 }
  0xfe   :  { %v1762_v43 = vpop.f32.mrb[11].mxu0 }
  0xff   :  { %1447 = vmatmul.mubr.msk.f32.gmra.mrb[8].mxu1 %vm128_vm0, %v1762_v43 }
 0x100   :  { %1449 = vmatprep.mubr.msk.f32.mxu1 %vm128_vm0, %v1752_v40 }
 0x103   :  { %v1768_v44 = vpop.f32.mrb[12].mxu0  ;;  %1450 = vmatmul.mubr.msk.f32.gmra.mrb[10].mxu1 %vm128_vm0, %v1758_v42 }
 0x104   :  { %v1772_v45 = vpop.f32.mrb[13].mxu0 }
 0x105   :  { %v1774_v46 = vpop.f32.mrb[14].mxu0  ;;  %1452 = vmatprep.mubr.msk.f32.mxu1 %vm128_vm0, %v1772_v45 }
 0x106   :  { %v1778_v47 = vpop.f32.mrb[15].mxu0 }
 0x107   :  { %1453 = vmatmul.mubr.msk.f32.gmra.mrb[12].mxu1 %vm128_vm0, %v1778_v47 }
 0x108   :  { %1455 = vmatprep.mubr.msk.f32.mxu1 %vm128_vm0, %v1768_v44 }
 0x10b   :  { %1456 = vmatmul.mubr.msk.f32.gmra.mrb[14].mxu1 %vm128_vm0, %v1774_v46 }
 0x1c2   :  { %v1436_v19 = vpop.f32.mrb[0].mxu1 }
 0x1c3   :  { %v372_v20 = vpop.f32.mrb[1].mxu1 }
 0x1c4   :  { %v467_v21 = vpack.c.bf16 %v1436_v19, %v372_v20 }
 0x1c6   :  { %v1439_v22 = vpop.f32.mrb[2].mxu1  ;;  %1458 = vmatprep.subr.bf16.mxu0 %v467_v21 }
 0x1c7   :  { %v382_v23 = vpop.f32.mrb[3].mxu1  ;;  %1459 = vmatpush3.bf16.msra.mxu0 %v467_v21  ;;  %v534_v21 = vpop.permute.xlu0 %533 }
 0x1c8   :  { %v468_v24 = vpack.c.bf16 %v1439_v22, %v382_v23 }
 0x1ca   :  { %v1442_v25 = vpop.f32.mrb[4].mxu1  ;;  %1460 = vmatprep.subr.bf16.mxu0 %v468_v24 }
 0x1cb   :  { %v392_v26 = vpop.f32.mrb[5].mxu1  ;;  %1461 = vmatpush3.bf16.msra.mxu0 %v468_v24 }
 0x1cc   :  { %v469_v27 = vpack.c.bf16 %v1442_v25, %v392_v26 }
 0x1ce   :  { %v1445_v28 = vpop.f32.mrb[6].mxu1  ;;  %1462 = vmatprep.subr.bf16.mxu0 %v469_v27 }
 0x1cf   :  { %v402_v29 = vpop.f32.mrb[7].mxu1  ;;  %1463 = vmatpush3.bf16.msra.mxu0 %v469_v27  ;;  %v539_v27 = vpop.permute.xlu1 %538 }
 0x1d0   :  { %v470_v30 = vpack.c.bf16 %v1445_v28, %v402_v29 }
 0x1d2   :  { %v1448_v31 = vpop.f32.mrb[8].mxu1  ;;  %1464 = vmatprep.subr.bf16.mxu0 %v470_v30 }
 0x1d3   :  { %v412_v48 = vpop.f32.mrb[9].mxu1  ;;  %1465 = vmatpush3.bf16.msra.mxu0 %v470_v30 }
 0x1d4   :  { %v471_v49 = vpack.c.bf16 %v1448_v31, %v412_v48  ;;  %v544_v48 = vpop.permute.xlu0 %543 }
 0x1d6   :  { %v1451_v50 = vpop.f32.mrb[10].mxu1  ;;  %1466 = vmatprep.subr.bf16.mxu0 %v471_v49 }
 0x1d7   :  { %v422_v51 = vpop.f32.mrb[11].mxu1  ;;  %1467 = vmatpush3.bf16.msra.mxu0 %v471_v49 }
 0x1d8   :  { %v472_v52 = vpack.c.bf16 %v1451_v50, %v422_v51 }
 0x1da   :  { %v1454_v53 = vpop.f32.mrb[12].mxu1  ;;  %1468 = vmatprep.subr.bf16.mxu0 %v472_v52 }
 0x1db   :  { %v432_v54 = vpop.f32.mrb[13].mxu1  ;;  %1469 = vmatpush3.bf16.msra.mxu0 %v472_v52 }
 0x1dc   :  { %v473_v55 = vpack.c.bf16 %v1454_v53, %v432_v54  ;;  %v549_v53 = vpop.permute.xlu1 %548 }
 0x1de   :  { %v1457_v56 = vpop.f32.mrb[14].mxu1  ;;  %1470 = vmatprep.subr.bf16.mxu0 %v473_v55 }
 0x1df   :  { %v442_v57 = vpop.f32.mrb[15].mxu1  ;;  %1471 = vmatpush3.bf16.msra.mxu0 %v473_v55 }
 0x1e0   :  { %v474_v58 = vpack.c.bf16 %v1457_v56, %v442_v57 }
 0x1e2   :  { %1472 = vmatprep.subr.bf16.mxu0 %v474_v58 }
 0x1e3   :  { %1473 = vmatpush3.bf16.msra.mxu0 %v474_v58 }
 0x1e6   :  { %1475 = vmatmul.mubr.bf16.vlgmr.msra.gmra.mrb[16].mxu0 %v1593_v59 }
 0x1e7   :  { %1478 = vmatprep.mubr.bf16.mxu0 %v1594_v60  ;;  %v554_v60 = vpop.permute.xlu0 %553 }
 0x1ee   :  { %1479 = vmatmul.mubr.bf16.gmra.mrb[20].mxu0 %v1595_v61 }
 0x1ef   :  { %1482 = vmatprep.mubr.bf16.mxu0 %v1596_v62 }
 0x1f6   :  { %1483 = vmatmul.mubr.bf16.gmra.mrb[24].mxu0 %v1597_v63 }
 0x1f7   :  { %1486 = vmatprep.mubr.bf16.mxu0 %v1598_v0 }
 0x1fe   :  { %1487 = vmatmul.mubr.bf16.gmra.mrb[28].mxu0 %v1599_v1  ;;  %v559_v1 = vpop.permute.xlu1 %558 }
 0x2b9   :  { %v1476_v8 = vpop.f32.mrb[16].mxu0 }
 0x2ba   :  { %v653_v9 = vpop.f32.mrb[17].mxu0  ;;  %v662_v13 = vadd.f32 %v1476_v8, %v504_v3 }
 0x2bb   :  { %v654_v11 = vadd.f32 %v653_v9, %v494_v2  ;;  %v1477_v12 = vpop.f32.mrb[18].mxu0 }
 0x2bc   :  { %v656_v14 = vpop.f32.mrb[19].mxu0  ;;  %v665_v18 = vadd.f32 %v1477_v12, %v509_v5  ;;  %v718_v20 = vmax.f32 %v662_v13, 0.0  ;;  %v564_v5 = vpop.permute.xlu0 %563 }
 0x2bd   :  { %v716_v15 = vmax.f32 %v654_v11, 0.0  ;;  %v657_v16 = vadd.f32 %v656_v14, %v499_v4  ;;  %v569_v13 = vpop.permute.xlu1 %568 }
 0x2be   :  { %v719_v24 = vmax.f32 %v665_v18, 0.0  ;;  %v1600_v18 = vld [vmem:[%s2036_s6] sm:$0xff]  }
 0x2bf   :  { %v717_v19 = vmax.f32 %v657_v16, 0.0  ;;  %1492 = vmatprep.mubr.msk.f32.mxu1 %vm733_vm13, %v716_v15  ;;  %1532 = vmatprep.mubr.bf16.mxu0 %v1600_v18 }
 0x2c1   :  { %v1480_v22 = vpop.f32.mrb[20].mxu0  ;;  %1493 = vmatmul.mubr.msk.f32.vlgmr.msra.gmra.mrb[16].mxu1 %vm733_vm13, %v717_v19  ;;  %v1601_v19 = vld [vmem:[%s2036_s6 + $0x20] sm:$0xff]  }
 0x2c2   :  { %v669_v23 = vpop.f32.mrb[21].mxu0  ;;  %1495 = vmatprep.mubr.msk.f32.mxu1 %vm733_vm13, %v718_v20  ;;  %v678_v28 = vadd.f32 %v1480_v22, %v524_v10 }
 0x2c3   :  { %v670_v25 = vadd.f32 %v669_v23, %v514_v6  ;;  %v1481_v26 = vpop.f32.mrb[22].mxu0 }
 0x2c4   :  { %v672_v29 = vpop.f32.mrb[23].mxu0  ;;  %v681_v49 = vadd.f32 %v1481_v26, %v529_v17  ;;  %v722_v51 = vmax.f32 %v678_v28, 0.0 }
 0x2c5   :  { %v720_v30 = vmax.f32 %v670_v25, 0.0  ;;  %v673_v31 = vadd.f32 %v672_v29, %v519_v7  ;;  %1496 = vmatmul.mubr.msk.f32.gmra.mrb[18].mxu1 %vm733_vm13, %v719_v24 }
 0x2c6   :  { %v723_v55 = vmax.f32 %v681_v49, 0.0 }
 0x2c7   :  { %v721_v50 = vmax.f32 %v673_v31, 0.0  ;;  %1498 = vmatprep.mubr.msk.f32.mxu1 %vm733_vm13, %v720_v30 }
 0x2c9   :  { %v1484_v52 = vpop.f32.mrb[24].mxu0  ;;  %1499 = vmatmul.mubr.msk.f32.gmra.mrb[20].mxu1 %vm733_vm13, %v721_v50 }
 0x2ca   :  { %v685_v54 = vpop.f32.mrb[25].mxu0  ;;  %1501 = vmatprep.mubr.msk.f32.mxu1 %vm733_vm13, %v722_v51  ;;  %v694_v58 = vadd.f32 %v1484_v52, %v544_v48 }
 0x2cb   :  { %v686_v56 = vadd.f32 %v685_v54, %v534_v21  ;;  %v1485_v57 = vpop.f32.mrb[26].mxu0 }
 0x2cc   :  { %v688_v59 = vpop.f32.mrb[27].mxu0  ;;  %v697_v63 = vadd.f32 %v1485_v57, %v549_v53  ;;  %v726_v2 = vmax.f32 %v694_v58, 0.0 }
 0x2cd   :  { %v724_v61 = vmax.f32 %v686_v56, 0.0  ;;  %v689_v62 = vadd.f32 %v688_v59, %v539_v27  ;;  %1502 = vmatmul.mubr.msk.f32.gmra.mrb[22].mxu1 %vm733_vm13, %v723_v55 }
 0x2ce   :  { %v727_v6 = vmax.f32 %v697_v63, 0.0 }
 0x2cf   :  { %v725_v0 = vmax.f32 %v689_v62, 0.0  ;;  %1504 = vmatprep.mubr.msk.f32.mxu1 %vm733_vm13, %v724_v61 }
 0x2d1   :  { %v1488_v3 = vpop.f32.mrb[28].mxu0  ;;  %1505 = vmatmul.mubr.msk.f32.gmra.mrb[24].mxu1 %vm733_vm13, %v725_v0  ;;  %v1606_v0 = vld [vmem:[%s2036_s6 + $0x18] sm:$0xff]  }
 0x2d2   :  { %v701_v4 = vpop.f32.mrb[29].mxu0  ;;  %1507 = vmatprep.mubr.msk.f32.mxu1 %vm733_vm13, %v726_v2  ;;  %v710_v9 = vadd.f32 %v1488_v3, %v564_v5  ;;  %v986_v2 = vpop.permute.xlu0 %985 }
 0x2d3   :  { %v702_v7 = vadd.f32 %v701_v4, %v554_v60  ;;  %v1489_v8 = vpop.f32.mrb[30].mxu0  ;;  %v991_v3 = vpop.permute.xlu1 %990 }
 0x2d4   :  { %v704_v10 = vpop.f32.mrb[31].mxu0  ;;  %v713_v14 = vadd.f32 %v1489_v8, %v569_v13  ;;  %v730_v16 = vmax.f32 %v710_v9, 0.0 }
 0x2d5   :  { %v728_v11 = vmax.f32 %v702_v7, 0.0  ;;  %v705_v12 = vadd.f32 %v704_v10, %v559_v1  ;;  %1508 = vmatmul.mubr.msk.f32.gmra.mrb[26].mxu1 %vm733_vm13, %v727_v6  ;;  %v1607_v1 = vld [vmem:[%s2036_s6 + $0x38] sm:$0xff]  }
 0x2d6   :  { %v731_v17 = vmax.f32 %v713_v14, 0.0  ;;  %v996_v4 = vpop.permute.xlu0 %995 }
 0x2d7   :  { %v729_v15 = vmax.f32 %v705_v12, 0.0  ;;  %1510 = vmatprep.mubr.msk.f32.mxu1 %vm733_vm13, %v728_v11  ;;  %v1001_v5 = vpop.permute.xlu1 %1000 }
 0x2d9   :  { %1511 = vmatmul.mubr.msk.f32.gmra.mrb[28].mxu1 %vm733_vm13, %v729_v15 }
 0x2da   :  { %1513 = vmatprep.mubr.msk.f32.mxu1 %vm733_vm13, %v730_v16  ;;  %v1006_v6 = vpop.permute.xlu0 %1005 }
 0x2db   :  { %v1011_v7 = vpop.permute.xlu1 %1010 }
 0x2dd   :  { %1514 = vmatmul.mubr.msk.f32.gmra.mrb[30].mxu1 %vm733_vm13, %v731_v17 }
 0x2de   :  { %1540 = vmatprep.mubr.bf16.mxu1 %v1601_v19  ;;  %v1016_v8 = vpop.permute.xlu0 %1015 }
 0x2df   :  { %v1021_v9 = vpop.permute.xlu1 %1020 }
 0x2e2   :  { %v1026_v10 = vpop.permute.xlu0 %1025 }
 0x2e3   :  { %v1031_v11 = vpop.permute.xlu1 %1030 }
 0x2e6   :  { %v1036_v12 = vpop.permute.xlu0 %1035 }
 0x2e7   :  { %v1041_v13 = vpop.permute.xlu1 %1040 }
 0x2ea   :  { %v1046_v14 = vpop.permute.xlu0 %1045 }
 0x2eb   :  { %v1051_v15 = vpop.permute.xlu1 %1050 }
 0x394   :  { %v1494_v20 = vpop.f32.mrb[16].mxu1 }
 0x395   :  { %v928_v21 = vadd.f32 %v1494_v20, %v1730_v35  ;;  %v848_v22 = vpop.f32.mrb[17].mxu1 }
 0x396   :  { %v927_v23 = vadd.f32 %v848_v22, %v1724_v33 }
 0x398   :  { %v943_v24 = vpack.c.bf16 %v928_v21, %v927_v23  ;;  %v1497_v25 = vpop.f32.mrb[18].mxu1 }
 0x399   :  { %v930_v26 = vadd.f32 %v1497_v25, %v1726_v34  ;;  %v858_v27 = vpop.f32.mrb[19].mxu1 }
 0x39a   :  { %v929_v28 = vadd.f32 %v1722_v32, %v858_v27  ;;  %1516 = vmatprep.subr.bf16.mxu0 %v943_v24  ;;  %1564 = vmatprep.subr.bf16.mxu1 %v943_v24 }
 0x39b   :  { %1517 = vmatpush3.bf16.msra.mxu0 %v943_v24  ;;  %1572 = vmatpush3.bf16.msra.mxu1 %v943_v24 }
 0x39c   :  { %v944_v29 = vpack.c.bf16 %v930_v26, %v929_v28  ;;  %v1500_v30 = vpop.f32.mrb[20].mxu1 }
 0x39d   :  { %v932_v31 = vadd.f32 %v1500_v30, %v1746_v39  ;;  %v868_v48 = vpop.f32.mrb[21].mxu1 }
 0x39e   :  { %v931_v35 = vadd.f32 %v868_v48, %v1740_v37  ;;  %1518 = vmatprep.subr.bf16.mxu0 %v944_v29  ;;  %1565 = vmatprep.subr.bf16.mxu1 %v944_v29  ;;  %v1056_v48 = vpop.permute.xlu0 %1055 }
 0x39f   :  { %1519 = vmatpush3.bf16.msra.mxu0 %v944_v29  ;;  %1573 = vmatpush3.bf16.msra.mxu1 %v944_v29 }
 0x3a0   :  { %v945_v33 = vpack.c.bf16 %v932_v31, %v931_v35  ;;  %v1503_v34 = vpop.f32.mrb[22].mxu1  ;;  %v1061_v35 = vpop.permute.xlu1 %1060 }
 0x3a1   :  { %v934_v49 = vadd.f32 %v1503_v34, %v1742_v38  ;;  %v878_v32 = vpop.f32.mrb[23].mxu1 }
 0x3a2   :  { %v933_v50 = vadd.f32 %v1736_v36, %v878_v32  ;;  %1520 = vmatprep.subr.bf16.mxu0 %v945_v33  ;;  %1566 = vmatprep.subr.bf16.mxu1 %v945_v33 }
 0x3a3   :  { %1521 = vmatpush3.bf16.msra.mxu0 %v945_v33  ;;  %1574 = vmatpush3.bf16.msra.mxu1 %v945_v33 }
 0x3a4   :  { %v946_v51 = vpack.c.bf16 %v934_v49, %v933_v50  ;;  %v1506_v39 = vpop.f32.mrb[24].mxu1 }
 0x3a5   :  { %v936_v52 = vadd.f32 %v1506_v39, %v1762_v43  ;;  %v888_v37 = vpop.f32.mrb[25].mxu1 }
 0x3a6   :  { %v935_v53 = vadd.f32 %v888_v37, %v1756_v41  ;;  %1522 = vmatprep.subr.bf16.mxu0 %v946_v51  ;;  %1567 = vmatprep.subr.bf16.mxu1 %v946_v51 }
 0x3a7   :  { %1523 = vmatpush3.bf16.msra.mxu0 %v946_v51  ;;  %1575 = vmatpush3.bf16.msra.mxu1 %v946_v51 }
 0x3a8   :  { %v947_v54 = vpack.c.bf16 %v936_v52, %v935_v53  ;;  %v1509_v38 = vpop.f32.mrb[26].mxu1 }
 0x3a9   :  { %v938_v55 = vadd.f32 %v1509_v38, %v1758_v42  ;;  %v898_v36 = vpop.f32.mrb[27].mxu1 }
 0x3aa   :  { %v937_v56 = vadd.f32 %v1752_v40, %v898_v36  ;;  %1524 = vmatprep.subr.bf16.mxu0 %v947_v54  ;;  %1568 = vmatprep.subr.bf16.mxu1 %v947_v54 }
 0x3ab   :  { %1525 = vmatpush3.bf16.msra.mxu0 %v947_v54  ;;  %1576 = vmatpush3.bf16.msra.mxu1 %v947_v54 }
 0x3ac   :  { %v948_v57 = vpack.c.bf16 %v938_v55, %v937_v56  ;;  %v1512_v43 = vpop.f32.mrb[28].mxu1 }
 0x3ad   :  { %v940_v58 = vadd.f32 %v1512_v43, %v1778_v47  ;;  %v908_v41 = vpop.f32.mrb[29].mxu1  ;;  %v1603_v47 = vld [vmem:[%s2036_s6 + $0x28] sm:$0xff]  }
 0x3ae   :  { %v939_v59 = vadd.f32 %v908_v41, %v1772_v45  ;;  %1526 = vmatprep.subr.bf16.mxu0 %v948_v57  ;;  %1569 = vmatprep.subr.bf16.mxu1 %v948_v57  ;;  %v1602_v45 = vld [vmem:[%s2036_s6 + $0x8] sm:$0xff]  }
 0x3af   :  { %1527 = vmatpush3.bf16.msra.mxu0 %v948_v57  ;;  %1577 = vmatpush3.bf16.msra.mxu1 %v948_v57 }
 0x3b0   :  { %v949_v60 = vpack.c.bf16 %v940_v58, %v939_v59  ;;  %v1515_v42 = vpop.f32.mrb[30].mxu1 }
 0x3b1   :  { %v942_v61 = vadd.f32 %v1515_v42, %v1774_v46  ;;  %v918_v40 = vpop.f32.mrb[31].mxu1  ;;  %v1605_v46 = vld [vmem:[%s2036_s6 + $0x30] sm:$0xff]  }
 0x3b2   :  { %v941_v62 = vadd.f32 %v1768_v44, %v918_v40  ;;  %1528 = vmatprep.subr.bf16.mxu0 %v949_v60  ;;  %1570 = vmatprep.subr.bf16.mxu1 %v949_v60  ;;  %v1604_v44 = vld [vmem:[%s2036_s6 + $0x10] sm:$0xff]  }
 0x3b3   :  { %1529 = vmatpush3.bf16.msra.mxu0 %v949_v60  ;;  %1578 = vmatpush3.bf16.msra.mxu1 %v949_v60 }
 0x3b4   :  { %v950_v63 = vpack.c.bf16 %v942_v61, %v941_v62 }
 0x3b6   :  { %1530 = vmatprep.subr.bf16.mxu0 %v950_v63  ;;  %1571 = vmatprep.subr.bf16.mxu1 %v950_v63 }
 0x3b7   :  { %1531 = vmatpush3.bf16.msra.mxu0 %v950_v63  ;;  %1579 = vmatpush3.bf16.msra.mxu1 %v950_v63 }
 0x3ba   :  { %1533 = vmatmul.mubr.bf16.vlgmr.msra.gmra.mrb[32].mxu0 %v1602_v45  ;;  %1541 = vmatmul.mubr.bf16.vlgmr.msra.gmra.mrb[32].mxu1 %v1603_v47 }
 0x3bb   :  { %1536 = vmatprep.mubr.bf16.mxu0 %v1604_v44  ;;  %1544 = vmatprep.mubr.bf16.mxu1 %v1605_v46 }
 0x3c2   :  { %1537 = vmatmul.mubr.bf16.gmra.mrb[36].mxu0 %v1606_v0  ;;  %1545 = vmatmul.mubr.bf16.gmra.mrb[36].mxu1 %v1607_v1 }
 0x48d   :  { %v1534_v16 = vpop.f32.mrb[32].mxu0  ;;  %v1542_v17 = vpop.f32.mrb[32].mxu1 }
 0x48e   :  { %v1154_v18 = vadd.f32 %v1534_v16, %v996_v4  ;;  %v1186_v19 = vadd.f32 %v1542_v17, %v1036_v12  ;;  %v1145_v20 = vpop.f32.mrb[33].mxu0  ;;  %v1177_v21 = vpop.f32.mrb[33].mxu1 }
 0x48f   :  { %v1146_v22 = vadd.f32 %v1145_v20, %v986_v2  ;;  %v1178_v23 = vadd.f32 %v1177_v21, %v1026_v10  ;;  %v1535_v24 = vpop.f32.mrb[34].mxu0  ;;  %v1543_v25 = vpop.f32.mrb[34].mxu1 }
 0x490   :  { %1210 = vst.msk [vmem:[%s2037_s8 + $0x10] sm:$0xff] %vm128_vm0, %v1154_v18  ;;  %1218 = vst.msk [vmem:[%s2037_s8 + $0x50] sm:$0xff] %vm128_vm0, %v1186_v19  ;;  %v1157_v26 = vadd.f32 %v1535_v24, %v1001_v5  ;;  %v1189_v27 = vadd.f32 %v1543_v25, %v1041_v13  ;;  %v1148_v28 = vpop.f32.mrb[35].mxu0  ;;  %v1180_v29 = vpop.f32.mrb[35].mxu1 }
 0x491   :  { %1208 = vst.msk [vmem:[%s2037_s8] sm:$0xff] %vm128_vm0, %v1146_v22  ;;  %1216 = vst.msk [vmem:[%s2037_s8 + $0x40] sm:$0xff] %vm128_vm0, %v1178_v23  ;;  %v1149_v30 = vadd.f32 %v1148_v28, %v991_v3  ;;  %v1181_v31 = vadd.f32 %v1180_v29, %v1031_v11 }
 0x492   :  { %1211 = vst.msk [vmem:[%s2037_s8 + $0x18] sm:$0xff] %vm128_vm0, %v1157_v26  ;;  %1219 = vst.msk [vmem:[%s2037_s8 + $0x58] sm:$0xff] %vm128_vm0, %v1189_v27 }
 0x493   :  { %1209 = vst.msk [vmem:[%s2037_s8 + $0x8] sm:$0xff] %vm128_vm0, %v1149_v30  ;;  %1217 = vst.msk [vmem:[%s2037_s8 + $0x48] sm:$0xff] %vm128_vm0, %v1181_v31 }
 0x495   :  { %v1538_v33 = vpop.f32.mrb[36].mxu0  ;;  %v1546_v34 = vpop.f32.mrb[36].mxu1 }
 0x496   :  { %v1170_v49 = vadd.f32 %v1538_v33, %v1016_v8  ;;  %v1202_v32 = vadd.f32 %v1546_v34, %v1056_v48  ;;  %v1161_v50 = vpop.f32.mrb[37].mxu0  ;;  %v1193_v51 = vpop.f32.mrb[37].mxu1 }
 0x497   :  { %v1162_v39 = vadd.f32 %v1161_v50, %v1006_v6  ;;  %v1194_v52 = vadd.f32 %v1193_v51, %v1046_v14  ;;  %v1539_v37 = vpop.f32.mrb[38].mxu0  ;;  %v1547_v53 = vpop.f32.mrb[38].mxu1 }
 0x498   :  { %1214 = vst.msk [vmem:[%s2037_s8 + $0x30] sm:$0xff] %vm128_vm0, %v1170_v49  ;;  %1222 = vst.msk [vmem:[%s2037_s8 + $0x70] sm:$0xff] %vm128_vm0, %v1202_v32  ;;  %v1173_v54 = vadd.f32 %v1539_v37, %v1021_v9  ;;  %v1205_v38 = vadd.f32 %v1547_v53, %v1061_v35  ;;  %v1164_v55 = vpop.f32.mrb[39].mxu0  ;;  %v1196_v36 = vpop.f32.mrb[39].mxu1 }
 0x499   :  { %1212 = vst.msk [vmem:[%s2037_s8 + $0x20] sm:$0xff] %vm128_vm0, %v1162_v39  ;;  %1220 = vst.msk [vmem:[%s2037_s8 + $0x60] sm:$0xff] %vm128_vm0, %v1194_v52  ;;  %v1165_v56 = vadd.f32 %v1164_v55, %v1011_v7  ;;  %v1197_v57 = vadd.f32 %v1196_v36, %v1051_v15 }
 0x49a   :  { %1215 = vst.msk [vmem:[%s2037_s8 + $0x38] sm:$0xff] %vm128_vm0, %v1173_v54  ;;  %1223 = vst.msk [vmem:[%s2037_s8 + $0x78] sm:$0xff] %vm128_vm0, %v1205_v38 }
 0x49b   :  { %1213 = vst.msk [vmem:[%s2037_s8 + $0x28] sm:$0xff] %vm128_vm0, %v1165_v56  ;;  %1221 = vst.msk [vmem:[%s2037_s8 + $0x68] sm:$0xff] %vm128_vm0, %v1197_v57 }

</bundles_post_ra>
